<compile_context>
chip_gen: v7x
topology: tpu7x:2x2x1
jax: 0.10.0
libtpu: 0.0.40
codegen_flags: <defaults>
</compile_context>

<pallas_src>
import functools
import math

import jax
import jax.numpy as jnp
from jax.experimental import pallas as pl
from jax.experimental.pallas import tpu as pltpu


# ----------------------------------------------------------------------------
# PE table construction (one-time buffer setup, matches torch __init__).
# ----------------------------------------------------------------------------
def build_pe_table(d_model: int, max_len: int = 300) -> jnp.ndarray:
    position = jnp.arange(0, max_len, dtype=jnp.float32)[:, None]              # (L, 1)
    div_term = jnp.exp(
        jnp.arange(0, d_model, 2, dtype=jnp.float32) * (-math.log(10000.0) / d_model)
    )                                                                           # (ceil(D/2),)
    angles = position * div_term                                                # (L, ceil(D/2))
    pe = jnp.zeros((max_len, d_model), dtype=jnp.float32)
    pe = pe.at[:, 0::2].set(jnp.sin(angles))
    if d_model % 2 != 0:
        pe = pe.at[:, 1::2].set(jnp.cos(angles)[:, :-1])
    else:
        pe = pe.at[:, 1::2].set(jnp.cos(angles))
    # pe.unsqueeze(0).transpose(0, 1) -> (max_len, 1, d_model)
    return pe[:, None, :]


# ----------------------------------------------------------------------------
# Stateless 32-bit hash (splitmix32 finalizer) — plain VPU integer ops.
# ----------------------------------------------------------------------------
def _hash_u32(x):
    x = x ^ (x >> jnp.uint32(16))
    x = x * jnp.uint32(0x7FEB352D)
    x = x ^ (x >> jnp.uint32(15))
    x = x * jnp.uint32(0x846CA68B)
    x = x ^ (x >> jnp.uint32(16))
    return x


# ----------------------------------------------------------------------------
# Pallas kernel: scale + positional add + (inverted) dropout.
# Works for 3-D blocks (tS, B, D) with pe (tS, 1, D), or 2-D blocks (tS, B*D)
# with pe (tS, B*D) — pe just has to be broadcastable against x.
# ----------------------------------------------------------------------------
def _pos_enc_kernel(seed_ref, x_ref, pe_ref, o_ref, *, scale, dropout_p,
                    apply_dropout, tile_rows, row_elems):
    val = x_ref[...].astype(jnp.float32) * scale + pe_ref[...].astype(jnp.float32)

    if apply_dropout:
        if dropout_p >= 1.0:
            # torch drops everything for p == 1.0.
            val = jnp.zeros_like(val)
        else:
            shape = val.shape
            # Globally-unique linear element index (int32, then bitcast-like
            # convert to uint32 for the hash).  Axis 0 is the tiled grid axis.
            row = (jax.lax.broadcasted_iota(jnp.int32, shape, 0)
                   + pl.program_id(0) * tile_rows)
            col = jax.lax.broadcasted_iota(jnp.int32, shape, len(shape) - 1)
            stride = shape[-1]
            for ax in range(len(shape) - 2, 0, -1):
                col = col + jax.lax.broadcasted_iota(jnp.int32, shape, ax) * stride
                stride *= shape[ax]
            lin = (row * row_elems + col).astype(jnp.uint32)

            seed_u = seed_ref[0].astype(jnp.uint32)
            bits = _hash_u32(lin ^ (seed_u * jnp.uint32(0x9E3779B1)))
            # Top 24 bits -> uniform in [0, 1); keep with probability (1 - p).
            u = (bits >> jnp.uint32(8)).astype(jnp.float32) * jnp.float32(1.0 / (1 << 24))
            keep = u >= jnp.float32(dropout_p)
            val = jnp.where(keep, val * (1.0 / (1.0 - dropout_p)), 0.0)

    o_ref[...] = val.astype(o_ref.dtype)


def _pick_rows(seq_len, row_bytes, target_bytes):
    """Rows per block: ~target_bytes of x per block; multiple of 8 (sublane) or full."""
    t = max(1, target_bytes // max(row_bytes, 1))
    if t >= seq_len:
        return seq_len
    return min(max(8, (t // 8) * 8), seq_len)


# ----------------------------------------------------------------------------
# Wrapper
# ----------------------------------------------------------------------------
def positional_encoding(x, pe_table, *, dropout_p=0.1, training=True, seed=0,
                        target_block_bytes=1 << 20):
    """x: (S, B, D), pe_table: (max_len, 1, D).  Returns (S, B, D)."""
    S, B, D = x.shape
    pe_s = pe_table[:S]                                   # (S, 1, D)
    scale = math.sqrt(float(D))
    apply_dropout = bool(training) and float(dropout_p) > 0.0
    seed_arr = jnp.array([seed], dtype=jnp.int32)
    row_elems = B * D

    # NOTE: for genuinely tiny tensors a fused XLA elementwise op is cheaper
    # than a pallas_call; kept as a kernel here so the demo exercises it.

    if D % 128 == 0:
        # Lane-dense already; keep PE un-broadcast (no extra HBM traffic),
        # broadcast over the batch (sublane) axis inside the kernel.
        x_in, pe_in = x, pe_s
        tS = _pick_rows(S, row_elems * x.dtype.itemsize, target_block_bytes)
        in_specs = [
            pl.BlockSpec((tS, B, D), lambda i, sd: (i, 0, 0)),
            pl.BlockSpec((tS, 1, D), lambda i, sd: (i, 0, 0)),
        ]
        out_spec = pl.BlockSpec((tS, B, D), lambda i, sd: (i, 0, 0))
        out_shape = jax.ShapeDtypeStruct((S, B, D), x.dtype)
    else:
        # Small d_model: fold batch into the lane axis for wider stores.
        # (Trades B-times PE reads for lane-dense vst — the bigger lever here.)
        x_in = x.reshape(S, B * D)
        pe_in = jnp.tile(pe_s[:, 0, :], (1, B))           # (S, B*D), col = b*D + d
        tS = _pick_rows(S, row_elems * x.dtype.itemsize, target_block_bytes)
        in_specs = [
            pl.BlockSpec((tS, B * D), lambda i, sd: (i, 0)),
            pl.BlockSpec((tS, B * D), lambda i, sd: (i, 0)),
        ]
        out_spec = pl.BlockSpec((tS, B * D), lambda i, sd: (i, 0))
        out_shape = jax.ShapeDtypeStruct((S, B * D), x.dtype)

    kernel = functools.partial(
        _pos_enc_kernel, scale=scale, dropout_p=float(dropout_p),
        apply_dropout=apply_dropout, tile_rows=tS, row_elems=row_elems,
    )

    out = pl.pallas_call(
        kernel,
        out_shape=out_shape,
        grid_spec=pltpu.PrefetchScalarGridSpec(
            num_scalar_prefetch=1,
            grid=(pl.cdiv(S, tS),),
            in_specs=in_specs,
            out_specs=out_spec,
        ),
        compiler_params=pltpu.CompilerParams(
            # Independent blocks -> shard across both TensorCores on v7x.
            dimension_semantics=("parallel",)),
    )(seed_arr, x_in, pe_in)

    return out.reshape(S, B, D)


# ----------------------------------------------------------------------------
# Pure-JAX reference (eval mode, dropout = identity).
# ----------------------------------------------------------------------------
def positional_encoding_ref(x, pe_table):
    S, _, D = x.shape
    return x * math.sqrt(float(D)) + pe_table[:S]


if __name__ == "__main__":
    key = jax.random.PRNGKey(0)
    k1, k2 = jax.random.split(key)

    # --- Test 1: small module-like shape (seq=8, batch=2, d_model=32), eval. ---
    S, B, D = 8, 2, 32
    x = jax.random.normal(k1, (S, B, D), dtype=jnp.float32)
    pe_table = build_pe_table(D, max_len=300)

    out_eval = jax.block_until_ready(
        positional_encoding(x, pe_table, dropout_p=0.1, training=False))
    ref = positional_encoding_ref(x, pe_table)
    assert out_eval.shape == (S, B, D)
    assert jnp.allclose(out_eval, ref, atol=1e-5, rtol=1e-5), "eval mismatch vs reference"

    # --- Test 2: training mode (inverted dropout, deterministic per seed). ---
    # NOTE: reproduces dropout *semantics*, not torch's exact random mask.
    p = 0.1
    out_train = jax.block_until_ready(
        positional_encoding(x, pe_table, dropout_p=p, training=True, seed=42))
    kept = out_train != 0
    # Kept entries must equal the scaled reference; dropped entries are zero.
    assert jnp.allclose(jnp.where(kept, out_train, 0.0),
                        jnp.where(kept, ref / (1.0 - p), 0.0),
                        atol=1e-5, rtol=1e-5), "training values mismatch"
    kept_frac = float(jnp.mean(kept.astype(jnp.float32)))
    assert 0.7 < kept_frac < 1.0, f"implausible keep fraction {kept_frac}"

    # --- Test 3: lane-dense 3-D path + multi-step pipelined grid (D % 128 == 0,
    #     S=300 -> several 64-row blocks incl. a partial tail block). ---
    S2, B2, D2 = 300, 4, 128
    x2 = jax.random.normal(k2, (S2, B2, D2), dtype=jnp.float32)
    pe_table2 = build_pe_table(D2, max_len=300)
    out2 = jax.block_until_ready(
        positional_encoding(x2, pe_table2, dropout_p=0.1, training=False,
                            target_block_bytes=1 << 17))
    ref2 = positional_encoding_ref(x2, pe_table2)
    assert jnp.allclose(out2, ref2, atol=1e-5, rtol=1e-5), "tiled eval mismatch"

    print("KERNEL_OK")
</pallas_src>

<mosaic_0001>
module attributes {stable_mosaic.version = 11 : i64} {
  func.func @_pos_enc_kernel(%arg0: i32, %arg1: memref<1xi32, #tpu.memory_space<smem>>, %arg2: memref<8x64xf32, #tpu.memory_space<vmem>>, %arg3: memref<8x64xf32, #tpu.memory_space<vmem>>, %arg4: memref<8x64xf32, #tpu.memory_space<vmem>>) attributes {dimension_semantics = [#tpu.dimension_semantics<parallel>], iteration_bounds = array<i64: 1>, scalar_prefetch = 1 : i64, scratch_operands = 0 : i64, tpu.core_type = #tpu.core_type<tc>, window_params = [{transform_indices = @transform_0, window_bounds = array<i64: 8, 64>}, {transform_indices = @transform_1, window_bounds = array<i64: 8, 64>}, {transform_indices = @transform_2, window_bounds = array<i64: 8, 64>}]} {
    %c0 = arith.constant 0 : index
    %c0_0 = arith.constant 0 : index
    %0 = vector.load %arg2[%c0, %c0_0] : memref<8x64xf32, #tpu.memory_space<vmem>>, vector<8x64xf32>
    %cst = arith.constant 5.65685415 : f32
    %1 = vector.broadcast %cst : f32 to vector<8x64xf32>
    %2 = arith.mulf %0, %1 : vector<8x64xf32>
    %c0_1 = arith.constant 0 : index
    %c0_2 = arith.constant 0 : index
    %3 = vector.load %arg3[%c0_1, %c0_2] : memref<8x64xf32, #tpu.memory_space<vmem>>, vector<8x64xf32>
    %4 = arith.addf %2, %3 : vector<8x64xf32>
    %c0_3 = arith.constant 0 : index
    %c0_4 = arith.constant 0 : index
    %5 = vector.load %arg4[%c0_3, %c0_4] : memref<8x64xf32, #tpu.memory_space<vmem>>, vector<8x64xf32>
    tpu.vector_store %arg4[%c0_3, %c0_4], %4 {strides = array<i32>} : memref<8x64xf32, #tpu.memory_space<vmem>>, vector<8x64xf32>,
    return
  }
  func.func @transform_0(%arg0: i32, %arg1: memref<1xi32, #tpu.memory_space<smem>>) -> (i32, i32) {
    %c0_i32 = arith.constant 0 : i32
    %c0_i32_0 = arith.constant 0 : i32
    return %arg0, %c0_i32 : i32, i32
  }
  func.func @transform_1(%arg0: i32, %arg1: memref<1xi32, #tpu.memory_space<smem>>) -> (i32, i32) {
    %c0_i32 = arith.constant 0 : i32
    %c0_i32_0 = arith.constant 0 : i32
    return %arg0, %c0_i32 : i32, i32
  }
  func.func @transform_2(%arg0: i32, %arg1: memref<1xi32, #tpu.memory_space<smem>>) -> (i32, i32) {
    %c0_i32 = arith.constant 0 : i32
    %c0_i32_0 = arith.constant 0 : i32
    return %arg0, %c0_i32 : i32, i32
  }
}

</mosaic_0001>

<bundles_post_ra>
// kernel: tpu_custom_call.1
= control target key start
LH: loop header
LB: loop body
LE: loop exit
PB: predicated region body
PF: predicated region fallthrough
CT: control target
= control target key end

     0   :  { %9 = vsyncpa [#allocation5], 0  ;;  %s194_s0 = inlined_call_operand.<no memory space> [shape: s32[1], index: 0, kind: input, shape index: {}]   ;;  %s195_s1 = inlined_call_operand.hbm [shape: f32[8,64], index: 1, kind: input, shape index: {}]   ;;  %s196_s2 = inlined_call_operand.hbm [shape: f32[8,64], index: 2, kind: input, shape index: {}]   ;;  %s197_s3 = inlined_call_operand.hbm [shape: f32[8,64], index: 3, kind: output, shape index: {}]  }
   0x1   :  { %10 = vsyncpa [#allocation8], 0 }
   0x2   :  { %11 = vsyncpa [#allocation6], 0  ;;  %s135_s12 = smov [#allocation4]   ;;  %s136_s14 = smov [#allocation7]  }
   0x3   :  { %s18_s13 = sshll.u32 %s135_s12, 4  ;;  %s28_s15 = sshll.u32 %s136_s14, 4  ;;  %s19_s13 = int_to_ptr.vmem [resolvable:$true] %s18_s13  ;;  %s29_s15 = int_to_ptr.vmem [resolvable:$true] %s28_s15 }
   0x4   :  { %s63_s17 = scalar_lea.hbm %s195_s1, 128 }
   0x5   :  { %p64_p0 = scmp.ne.s32.totalorder %s195_s1, %s63_s17  ;;  %p67_p1 = scmp.lt.u32.totalorder %s63_s17, %s195_s1 }
   0x7   :  { %p69_p2 = pnand %p67_p1, %p64_p0 }
   0x9   :  { %72 = shalt.err (!%p69_p2)
}
   0xa   :  { %s73_s22 = scalar_lea.vmem %s19_s13, 128  ;;  %p78_p4 = scmp.lt.s32.totalorder %s19_s13, %s19_s13 }
   0xb   :  { %p74_p3 = scmp.ne.s32.totalorder %s19_s13, %s73_s22  ;;  %p79_p5 = scmp.lt.s32.totalorder %s73_s22, %s73_s22 }
   0xd   :  { %p80_p6 = por %p79_p5, %p78_p4 }
   0xf   :  { %p81_p7 = pnand %p80_p6, %p74_p3 }
  0x11   :  { %84 = shalt.err (!%p81_p7)
}
  0x12   :  { %21 = dma.hbm_to_vmem [thread:$0]  %s195_s1, 128, %s19_s13, [#allocation5]  }
  0x13   :  { %s85_s27 = scalar_lea.hbm %s196_s2, 128 }
  0x14   :  { %p86_p8 = scmp.ne.s32.totalorder %s196_s2, %s85_s27  ;;  %p89_p9 = scmp.lt.u32.totalorder %s85_s27, %s196_s2 }
  0x16   :  { %p91_p10 = pnand %p89_p9, %p86_p8 }
  0x18   :  { %94 = shalt.err (!%p91_p10)
}
  0x19   :  { %s95_s5 = scalar_lea.vmem %s29_s15, 128  ;;  %p100_p12 = scmp.lt.s32.totalorder %s29_s15, %s29_s15 }
  0x1a   :  { %p96_p11 = scmp.ne.s32.totalorder %s29_s15, %s95_s5  ;;  %p101_p13 = scmp.lt.s32.totalorder %s95_s5, %s95_s5 }
  0x1c   :  { %p102_p0 = por %p101_p13, %p100_p12 }
  0x1e   :  { %p103_p1 = pnand %p102_p0, %p96_p11 }
  0x20   :  { %106 = shalt.err (!%p103_p1)
}
  0x21   :  { %31 = dma.hbm_to_vmem [thread:$0]  %s196_s2, 128, %s29_s15, [#allocation8]  }
  0x22   :  { %129 = dma.done.wait [#allocation5], 128  }
  0x23   :  { %130 = vsyncadd [#allocation5], 4294967168 }
  0x24   :  { %131 = dma.done.wait [#allocation8], 128  }
  0x25   :  { %132 = vsyncadd [#allocation8], 4294967168  ;;  %v38_v0 = vld [vmem:[#allocation4] sm:$0xff]  ;;  %v40_v1 = vld [vmem:[#allocation7] sm:$0xff]  ;;  %s137_s7 = smov [#allocation9]   ;;  %vm42_vm0 = vcmask 523264  }
  0x26   :  { %s50_s8 = sshll.u32 %s137_s7, 4  ;;  %v39_v2 = vmul.f32 5.656854, %v38_v0  ;;  %s51_s8 = int_to_ptr.vmem [resolvable:$true] %s50_s8 }
  0x27   :  { %s107_s9 = scalar_lea.vmem %s51_s8, 128  ;;  %p112_p3 = scmp.lt.s32.totalorder %s51_s8, %s51_s8 }
  0x28   :  { %v41_v3 = vadd.f32 %v40_v1, %v39_v2  ;;  %p108_p2 = scmp.ne.s32.totalorder %s51_s8, %s107_s9  ;;  %p113_p4 = scmp.lt.s32.totalorder %s107_s9, %s107_s9 }
  0x2a   :  { %43 = vst.msk [vmem:[#allocation9] sm:$0xff] %vm42_vm0, %v41_v3  ;;  %p114_p5 = por %p113_p4, %p112_p3 }
  0x2c   :  { %p115_p6 = pnand %p114_p5, %p108_p2 }
  0x2e   :  { %118 = shalt.err (!%p115_p6)
}
  0x2f   :  { %s119_s11 = scalar_lea.hbm %s197_s3, 128 }
  0x30   :  { %p120_p7 = scmp.ne.s32.totalorder %s197_s3, %s119_s11  ;;  %p123_p8 = scmp.lt.u32.totalorder %s119_s11, %s197_s3 }
  0x32   :  { %p125_p9 = pnand %p123_p8, %p120_p7 }
  0x34   :  { %128 = shalt.err (!%p125_p9)
}
  0x35   :  { %53 = dma.vmem_to_hbm [thread:$0]  %s51_s8, 128, %s197_s3, [#allocation6]  }
  0x36   :  { %133 = dma.done.wait [#allocation6], 128  }
  0x37   :  { %134 = vsyncadd [#allocation6], 4294967168 }
  0x38   :  { %57 = vsyncpa [#allocation5], 1 }
  0x39   :  { %58 = vsyncpa [#allocation8], 1 }
  0x3a   :  { %59 = vsyncpa [#allocation6], 1 }

</bundles_post_ra>
